<compile_context>
chip_gen: v7x
topology: tpu7x:2x2x1
jax: 0.10.0
libtpu: 0.0.40
codegen_flags: <defaults>
</compile_context>

<pallas_src>
import jax
import jax.numpy as jnp
from jax.experimental import pallas as pl
from jax.experimental.pallas import tpu as pltpu

# ----------------------------- cfg (synthetic, all lambdas enabled) -----------------------------
NUM_NODES = 16
NUM_NEIGHBORS = 4
USE_CONSTANTS = True
AGGREGATE_COVERAGE_WITH_MAX = True
SOFT_TRANSFER_SCALE = 32.0
LEVEL_SET = 0.01
INTERIOR_POINT_WEIGHT = 2.0

LAMBDA_SAMPLING_UNIFORM = 1.0
LAMBDA_SAMPLING_NEAR_SURFACE = 1.0
LAMBDA_SAMPLING_NODE_CENTER = 0.5
LAMBDA_AFFINITY_REL_DIST = 0.5
LAMBDA_AFFINITY_ABS_DIST = 0.5
LAMBDA_UNIQUE_NEIGHBOR = 0.1
LAMBDA_VIEWPOINT_POSITION = 0.1
LAMBDA_VIEWPOINT_SCALE = 0.1
LAMBDA_VIEWPOINT_CONSTANT = 0.1
LAMBDA_VIEWPOINT_ROTATION = 0.1
LAMBDA_SURFACE_CONSISTENCY = 0.25

MAX_TP = 2048  # max points per tile (lane axis); one tile == whole point set when it fits


def _choose_tile(P):
    """Pick (padded point count, lane-tile size). Whole set in one tile when <= MAX_TP."""
    p128 = ((P + 127) // 128) * 128
    if p128 <= MAX_TP:
        return p128, p128
    p_pad = ((P + MAX_TP - 1) // MAX_TP) * MAX_TP
    return p_pad, MAX_TP


# ======================================= Pallas kernels =========================================

def point_loss_kernel(pts_ref, prm_ref, out_ref):
    """PointLoss hot path (fused over sample sets).

    pts_ref : (1, 1, 4, TP)  rows = x, y, z, sdf_gt (points on lanes)
    prm_ref : (1, N, 8)      packed per-node params [cx,cy,cz, 1/sx^2,1/sy^2,1/sz^2, const, pad]
    out_ref : (1, 1, 1, TP)  per-point weighted squared classification error (lane-dense)
    """
    px = pts_ref[0, 0, 0:1, :]          # (1, TP)
    py = pts_ref[0, 0, 1:2, :]
    pz = pts_ref[0, 0, 2:3, :]
    sdf_gt = pts_ref[0, 0, 3:4, :]

    cx = prm_ref[0, :, 0:1]             # (N, 1)
    cy = prm_ref[0, :, 1:2]
    cz = prm_ref[0, :, 2:3]
    isx = prm_ref[0, :, 3:4]            # 1/sx^2
    isy = prm_ref[0, :, 4:5]
    isz = prm_ref[0, :, 5:6]
    const = prm_ref[0, :, 6:7]

    dx = px - cx                        # (N, TP)
    dy = py - cy
    dz = pz - cz
    d2 = dx * dx * isx + dy * dy * isy + dz * dz * isz
    w = jnp.exp(-0.5 * d2)
    if USE_CONSTANTS:
        w = const * w

    if AGGREGATE_COVERAGE_WITH_MAX:
        coverage = jnp.max(w, axis=0, keepdims=True)       # (1, TP)  XLU sublane reduce
    else:
        coverage = jnp.sum(w, axis=0, keepdims=True)
    sdf_pred = -coverage

    # compute_inverse_occupancy (synthetic): sigmoid(scale * (sdf - level_set))
    class_pred = jax.nn.sigmoid(SOFT_TRANSFER_SCALE * (sdf_pred - LEVEL_SET))

    is_outside = sdf_gt > 0.0
    class_gt = is_outside.astype(jnp.float32)
    weights = jnp.where(is_outside, 1.0, INTERIOR_POINT_WEIGHT)

    diff = class_gt - class_pred
    out_ref[0, 0, :, :] = weights * diff * diff            # (1, TP), unmasked lane-dense store


def surface_transform_kernel(pts_ref, prm_ref, m_ref, out_ref):
    """SurfaceConsistencyLoss hot path: RBF skinning weights + MXU-blended rigid transform.

    pts_ref : (1, 3, TP)   source surface points (x/y/z on sublanes)
    prm_ref : (1, N, 8)    packed source node params [cx,cy,cz, inv_scale_sq(3), const, pad]
    m_ref   : (1, 8, 4N)   blend matrix: rows 0..2 = [R[:,i,0] | R[:,i,1] | R[:,i,2] | t_target[:,i]]
    out_ref : (1, 3, TP)   transformed points
    """
    px = pts_ref[0, 0:1, :]
    py = pts_ref[0, 1:2, :]
    pz = pts_ref[0, 2:3, :]

    cx = prm_ref[0, :, 0:1]
    cy = prm_ref[0, :, 1:2]
    cz = prm_ref[0, :, 2:3]
    isx = prm_ref[0, :, 3:4]
    isy = prm_ref[0, :, 4:5]
    isz = prm_ref[0, :, 5:6]
    const = prm_ref[0, :, 6:7]

    dx = px - cx                        # (N, TP)  == p - t_source (x)
    dy = py - cy
    dz = pz - cz
    d2 = dx * dx * isx + dy * dy * isy + dz * dz * isz
    w = jnp.exp(-0.5 * d2)
    if USE_CONSTANTS:
        w = const * w

    denom = jnp.sum(w, axis=0, keepdims=True)              # (1, TP)
    inv = pl.reciprocal(denom + 1e-8, approx=True)         # eps: no NaN when far from all nodes

    # out_i = (sum_n w_n * (R_n @ d_n + t_tgt_n)_i) / sum_n w_n  as one MXU contraction:
    stacked = jnp.concatenate([w * dx, w * dy, w * dz, w], axis=0)    # (4N, TP)
    q = jnp.dot(m_ref[0, :, :], stacked,
                preferred_element_type=jnp.float32)                   # (8, TP), rows 3..7 are zero
    out_ref[0, :, :] = q[0:3, :] * inv                                # single (3, TP) store


# ======================================= Pallas wrappers ========================================

def pack_rbf_params(constants, scales, centers):
    """[B, N, 8] = [centers(3), 1/scale^2(3), constant(1), pad(1)] (f32)."""
    B, N = constants.shape
    inv_s2 = 1.0 / (scales.astype(jnp.float32) * scales.astype(jnp.float32))
    return jnp.concatenate([
        centers.astype(jnp.float32),
        inv_s2,
        constants[..., None].astype(jnp.float32),
        jnp.zeros((B, N, 1), jnp.float32),
    ], axis=-1)


def point_losses_pallas(sample_sets, constants, scales, centers):
    """Fused PointLoss for several sample sets (each [B, P_s, 4]). Returns list of scalar means."""
    B = sample_sets[0].shape[0]
    N = centers.shape[1]
    Ps = [int(s.shape[1]) for s in sample_sets]
    P_pad, TP = _choose_tile(max(Ps))
    num_tiles = P_pad // TP

    stacked = []
    for s in sample_sets:
        st = jnp.transpose(s.astype(jnp.float32), (0, 2, 1))           # [B, 4, P_s]
        pad = P_pad - st.shape[2]
        if pad:
            st = jnp.pad(st, ((0, 0), (0, 0), (0, pad)))
        stacked.append(st)
    pts = jnp.stack(stacked, axis=0)                                    # [S, B, 4, P_pad]
    S = pts.shape[0]

    prm = pack_rbf_params(constants, scales, centers)                   # [B, N, 8]

    flops = int(S * B * P_pad * N * 20)
    bytes_accessed = int(pts.size * 4 + prm.size * 4 + S * B * P_pad * 4)
    per_point = pl.pallas_call(
        point_loss_kernel,
        out_shape=jax.ShapeDtypeStruct((S, B, 1, P_pad), jnp.float32),
        grid=(S, B, num_tiles),
        in_specs=[
            pl.BlockSpec((1, 1, 4, TP), lambda s, b, t: (s, b, 0, t)),
            pl.BlockSpec((1, N, 8), lambda s, b, t: (b, 0, 0)),
        ],
        out_specs=pl.BlockSpec((1, 1, 1, TP), lambda s, b, t: (s, b, 0, t)),
        compiler_params=pltpu.CompilerParams(
            dimension_semantics=("parallel", "parallel", "parallel")),
        cost_estimate=pl.CostEstimate(
            flops=flops,
            transcendentals=int(S * B * P_pad * (N + 1)),
            bytes_accessed=bytes_accessed),
    )(pts, prm)

    lane = jnp.arange(P_pad)
    losses = []
    for si, P in enumerate(Ps):
        mask = (lane < P).astype(jnp.float32)
        losses.append(jnp.sum(per_point[si, :, 0, :] * mask[None, :]) / float(B * P))
    return losses


def build_blend_matrix(R_rel, centers_tgt):
    """[B, 8, 4N]: rows 0..2 = [R[:,i,0](N) | R[:,i,1](N) | R[:,i,2](N) | t_tgt[:,i](N)], rows 3..7 zero."""
    B, N = centers_tgt.shape[:2]
    Rt = jnp.transpose(R_rel.astype(jnp.float32), (0, 2, 3, 1)).reshape(B, 3, 3 * N)
    Tt = jnp.transpose(centers_tgt.astype(jnp.float32), (0, 2, 1))      # [B, 3, N]
    M = jnp.concatenate([Rt, Tt], axis=-1)                              # [B, 3, 4N]
    return jnp.pad(M, ((0, 0), (0, 5), (0, 0)))                         # [B, 8, 4N]


def surface_transform_pallas(points, constants, scales, centers_src, centers_tgt, R_rel):
    """Returns skinning-blended transformed points, shape [B, P, 3]."""
    B, P, _ = points.shape
    N = centers_src.shape[1]
    P_pad, TP = _choose_tile(P)
    num_tiles = P_pad // TP

    pts_t = jnp.transpose(points.astype(jnp.float32), (0, 2, 1))        # [B, 3, P]
    if P_pad > P:
        pts_t = jnp.pad(pts_t, ((0, 0), (0, 0), (0, P_pad - P)))

    prm = pack_rbf_params(constants, scales, centers_src)               # [B, N, 8]
    M = build_blend_matrix(R_rel, centers_tgt)                          # [B, 8, 4N]

    flops = int(B * P_pad * N * 30 + B * P_pad * 8 * 4 * N * 2)
    bytes_accessed = int(pts_t.size * 4 + prm.size * 4 + M.size * 4 + B * 3 * P_pad * 4)
    out = pl.pallas_call(
        surface_transform_kernel,
        out_shape=jax.ShapeDtypeStruct((B, 3, P_pad), jnp.float32),
        grid=(B, num_tiles),
        in_specs=[
            pl.BlockSpec((1, 3, TP), lambda b, t: (b, 0, t)),
            pl.BlockSpec((1, N, 8), lambda b, t: (b, 0, 0)),
            pl.BlockSpec((1, 8, 4 * N), lambda b, t: (b, 0, 0)),
        ],
        out_specs=pl.BlockSpec((1, 3, TP), lambda b, t: (b, 0, t)),
        compiler_params=pltpu.CompilerParams(
            dimension_semantics=("parallel", "parallel")),
        cost_estimate=pl.CostEstimate(
            flops=flops,
            transcendentals=int(B * P_pad * (N + 1)),
            bytes_accessed=bytes_accessed),
    )(pts_t, prm, M)
    return jnp.transpose(out[:, :, :P], (0, 2, 1))


# =================================== plain-JAX helpers / glue ====================================

def axis_angle_to_matrix(omega):
    theta = jnp.linalg.norm(omega, axis=-1, keepdims=True)                  # [..., 1]
    k = omega / jnp.maximum(theta, 1e-8)
    kx, ky, kz = k[..., 0], k[..., 1], k[..., 2]
    z = jnp.zeros_like(kx)
    K = jnp.stack([jnp.stack([z, -kz, ky], axis=-1),
                   jnp.stack([kz, z, -kx], axis=-1),
                   jnp.stack([-ky, kx, z], axis=-1)], axis=-2)              # [..., 3, 3]
    st = jnp.sin(theta)[..., None]
    ct = jnp.cos(theta)[..., None]
    return jnp.eye(3, dtype=omega.dtype) + st * K + (1.0 - ct) * (K @ K)


def extract_view_omegas_from_embedding(embedding, num_nodes):
    B = embedding.shape[0]
    e = embedding.reshape(B, num_nodes, -1)
    return e[:, :, 7:10]


def convert_embedding_to_explicit_params(embedding, rotated2gaps, num_nodes):
    # synthetic parameterization: per node [constant(1), scale(3), center(3), omega(3)]
    B = embedding.shape[0]
    e = embedding.reshape(B, num_nodes, 10)
    constants = jax.nn.softplus(e[:, :, 0])                                  # [B, N]
    scales = 0.5 + jax.nn.softplus(e[:, :, 1:4])                             # [B, N, 3]
    centers_local = e[:, :, 4:7]
    omegas = e[:, :, 7:10]
    rotations = axis_angle_to_matrix(omegas)                                 # [B, N, 3, 3]
    A = rotated2gaps[:, :3, :3]
    t = rotated2gaps[:, :3, 3]
    centers = jnp.einsum('bij,bnj->bni', A, centers_local) + t[:, None, :]   # [B, N, 3]
    return constants, scales, rotations, centers


def grid_sample_3d(vol, coords):
    """Trilinear sampling, align_corners=True, padding_mode='border'.
    vol: [D, H, W]; coords: [M, 3] normalized in [-1, 1], order (x->W, y->H, z->D)."""
    D, H, W = vol.shape
    x = jnp.clip((coords[:, 0] + 1.0) * 0.5 * (W - 1), 0.0, W - 1.0)
    y = jnp.clip((coords[:, 1] + 1.0) * 0.5 * (H - 1), 0.0, H - 1.0)
    z = jnp.clip((coords[:, 2] + 1.0) * 0.5 * (D - 1), 0.0, D - 1.0)
    x0f, y0f, z0f = jnp.floor(x), jnp.floor(y), jnp.floor(z)
    tx, ty, tz = x - x0f, y - y0f, z - z0f
    x0, y0, z0 = x0f.astype(jnp.int32), y0f.astype(jnp.int32), z0f.astype(jnp.int32)
    x1 = jnp.minimum(x0 + 1, W - 1)
    y1 = jnp.minimum(y0 + 1, H - 1)
    z1 = jnp.minimum(z0 + 1, D - 1)
    c000 = vol[z0, y0, x0]; c001 = vol[z0, y0, x1]
    c010 = vol[z0, y1, x0]; c011 = vol[z0, y1, x1]
    c100 = vol[z1, y0, x0]; c101 = vol[z1, y0, x1]
    c110 = vol[z1, y1, x0]; c111 = vol[z1, y1, x1]
    c00 = c000 * (1 - tx) + c001 * tx
    c01 = c010 * (1 - tx) + c011 * tx
    c10 = c100 * (1 - tx) + c101 * tx
    c11 = c110 * (1 - tx) + c111 * tx
    c0 = c00 * (1 - ty) + c01 * ty
    c1 = c10 * (1 - ty) + c11 * ty
    return c0 * (1 - tz) + c1 * tz


# batched (vmapped) trilinear sampler — replaces per-batch Python loops.
# TODO(synk): grid_sample is gather-dominated; kept as an XLA op rather than a Pallas kernel.
grid_sample_3d_batched = jax.vmap(grid_sample_3d, in_axes=(0, 0))


def bounding_box_error(centers, bbox_lower, bbox_upper):
    lo = jnp.maximum(bbox_lower[:, None, :] - centers, 0.0)
    hi = jnp.maximum(centers - bbox_upper[:, None, :], 0.0)
    return jnp.sum(lo + hi, axis=-1)                                         # [B, N]


def node_center_loss_fn(constants, scales, centers, grid, world2grid, bbox_lower, bbox_upper):
    bbox_err = bounding_box_error(centers, bbox_lower, bbox_upper)
    A = world2grid[:, :3, :3]
    t = world2grid[:, :3, 3]
    cg = jnp.einsum('bij,bnj->bni', A, centers) + t[:, None, :]
    D, H, W = grid.shape[1], grid.shape[2], grid.shape[3]
    norm = jnp.stack([cg[..., 0] / float(W - 1),
                      cg[..., 1] / float(H - 1),
                      cg[..., 2] / float(D - 1)], axis=-1) * 2.0 - 1.0
    sdf = grid_sample_3d_batched(grid, norm)                                 # [B, N]
    cd_err = jnp.maximum(sdf, 0.0)
    return jnp.mean(bbox_err + cd_err)


def affinity_loss_fn(centers, source_idxs, target_idxs, pred_distances, pair_weights):
    sp = centers[:, source_idxs]            # [B, num_pairs, 3]
    tp = centers[:, target_idxs]
    diff = sp - tp
    dist2 = jnp.sum(diff * diff, axis=2)
    loss_abs = jnp.mean(pair_weights * dist2)
    pred2 = pred_distances * pred_distances
    loss_rel = jnp.mean(pair_weights * jnp.abs(pred2 - dist2))
    return loss_rel, loss_abs


def unique_neighbor_loss_fn(affinity_matrix):
    """sum_{s<t} sum(A_s * A_t) == 0.5 * (sum((sum_s A_s)^2) - sum_s sum(A_s^2)); no pair loop."""
    K = affinity_matrix.shape[0]
    total = jnp.sum(affinity_matrix, axis=0)                                 # [N, N]
    loss = 0.5 * (jnp.sum(total * total) - jnp.sum(affinity_matrix * affinity_matrix))
    num_pairs = K * (K - 1) / 2
    return loss / float(num_pairs)


def viewpoint_consistency_loss_fn(constants, scales, rotations, centers):
    B = constants.shape[0]
    N = centers.shape[1]
    cp = centers.reshape(B // 2, 2, N, -1)
    lp = jnp.mean((cp[:, 0] - cp[:, 1]) ** 2)
    sp = scales.reshape(B // 2, 2, N, -1)
    ls = jnp.mean((sp[:, 0] - sp[:, 1]) ** 2)
    kp = constants.reshape(B // 2, 2, N, -1)
    lc = jnp.mean((kp[:, 0] - kp[:, 1]) ** 2)
    rp = rotations.reshape(B // 2, 2, N, 3, 3)
    lr = jnp.mean((rp[:, 0] - rp[:, 1]) ** 2)
    return lp, ls, lc, lr


def surface_consistency_loss_fn(constants, scales, rotations, centers, surface_samples, grid, world2grid):
    B, P = surface_samples.shape[0], surface_samples.shape[1]
    pts = surface_samples[:, :, :3]
    tgt_idx = jnp.array([(b + 1) % B for b in range(B)], dtype=jnp.int32)
    R_tgt = rotations[tgt_idx]
    R_rel = jnp.einsum('bnij,bnkj->bnik', R_tgt, rotations)                  # R_target @ R_source^T
    t_tgt = centers[tgt_idx]
    transformed = surface_transform_pallas(pts, constants, scales, centers, t_tgt, R_rel)  # [B, P, 3]

    # vmapped target-grid SDF lookup (replaces per-batch Python loop).
    w2g_tgt = world2grid[tgt_idx]
    A = w2g_tgt[:, :3, :3]
    t = w2g_tgt[:, :3, 3]
    pg = jnp.einsum('bij,bpj->bpi', A, transformed) + t[:, None, :]          # [B, P, 3] grid-space
    D, H, W = grid.shape[1], grid.shape[2], grid.shape[3]
    norm = jnp.stack([pg[..., 0] / float(W - 1),
                      pg[..., 1] / float(H - 1),
                      pg[..., 2] / float(D - 1)], axis=-1) * 2.0 - 1.0
    sdf = grid_sample_3d_batched(grid[tgt_idx], norm)                        # [B, P]
    return jnp.sum(jnp.mean(sdf * sdf, axis=1))                              # sum of per-batch means


# ======================================= SamplerLoss ============================================

def sampler_loss_forward(embedding, uniform_samples, near_surface_samples, surface_samples,
                         grid, world2grid, world2orig, rotated2gaps, bbox_lower, bbox_upper,
                         source_idxs, target_idxs, pred_distances, pair_weights,
                         affinity_matrix, evaluate=False):
    loss_total = jnp.zeros((1,), dtype=embedding.dtype)

    _view_omegas = extract_view_omegas_from_embedding(embedding, NUM_NODES)  # kept for parity (unused)
    constants, scales, rotations, centers = convert_embedding_to_explicit_params(
        embedding, rotated2gaps, NUM_NODES)

    # Fused PointLoss over both sample sets (single pallas_call).
    loss_uniform, loss_near_surface = point_losses_pallas(
        [uniform_samples, near_surface_samples], constants, scales, centers)
    loss_total += LAMBDA_SAMPLING_UNIFORM * loss_uniform
    loss_total += LAMBDA_SAMPLING_NEAR_SURFACE * loss_near_surface

    loss_node_center = node_center_loss_fn(constants, scales, centers, grid, world2grid,
                                           bbox_lower, bbox_upper)
    loss_total += LAMBDA_SAMPLING_NODE_CENTER * loss_node_center

    loss_affinity_rel, loss_affinity_abs = affinity_loss_fn(
        centers, source_idxs, target_idxs, pred_distances, pair_weights)
    loss_total += LAMBDA_AFFINITY_REL_DIST * loss_affinity_rel
    loss_total += LAMBDA_AFFINITY_ABS_DIST * loss_affinity_abs

    loss_unique_neighbor = unique_neighbor_loss_fn(affinity_matrix)
    loss_total += LAMBDA_UNIQUE_NEIGHBOR * loss_unique_neighbor

    lvp, lvs, lvc, lvr = viewpoint_consistency_loss_fn(constants, scales, rotations, centers)
    loss_total += LAMBDA_VIEWPOINT_POSITION * lvp
    loss_total += LAMBDA_VIEWPOINT_SCALE * lvs
    loss_total += LAMBDA_VIEWPOINT_CONSTANT * lvc
    loss_total += LAMBDA_VIEWPOINT_ROTATION * lvr

    loss_surface_consistency = surface_consistency_loss_fn(
        constants, scales, rotations, centers, surface_samples, grid, world2grid)
    loss_total += LAMBDA_SURFACE_CONSISTENCY * loss_surface_consistency

    if evaluate:
        return loss_total, {
            'loss_uniform': loss_uniform,
            'loss_near_surface': loss_near_surface,
            'loss_node_center': loss_node_center,
            'loss_affinity_rel': loss_affinity_rel,
            'loss_affinity_abs': loss_affinity_abs,
            'loss_unique_neighbor': loss_unique_neighbor,
            'loss_viewpoint_position': lvp,
            'loss_viewpoint_scale': lvs,
            'loss_viewpoint_constant': lvc,
            'loss_viewpoint_rotation': lvr,
            'loss_surface_consistency': loss_surface_consistency,
        }
    return loss_total


# ========================================== main ================================================

if __name__ == "__main__":
    key = jax.random.PRNGKey(0)
    ks = jax.random.split(key, 12)

    B = 2            # must be even (viewpoint consistency)
    P_SAMPLES = 256  # uniform / near-surface points per batch
    P_SURF = 128     # surface points per batch
    D = H = W = 8
    NUM_PAIRS = 8

    embedding = 0.5 * jax.random.normal(ks[0], (B, NUM_NODES * 10), dtype=jnp.float32)

    uni_xyz = jax.random.uniform(ks[1], (B, P_SAMPLES, 3), minval=-1.0, maxval=1.0)
    uni_sdf = 0.3 * jax.random.normal(ks[2], (B, P_SAMPLES, 1))
    uniform_samples = jnp.concatenate([uni_xyz, uni_sdf], axis=-1).astype(jnp.float32)

    ns_xyz = jax.random.uniform(ks[3], (B, P_SAMPLES, 3), minval=-1.0, maxval=1.0)
    ns_sdf = 0.05 * jax.random.normal(ks[4], (B, P_SAMPLES, 1))
    near_surface_samples = jnp.concatenate([ns_xyz, ns_sdf], axis=-1).astype(jnp.float32)

    surface_samples = jax.random.uniform(ks[5], (B, P_SURF, 6),
                                         minval=-1.0, maxval=1.0).astype(jnp.float32)

    grid = 0.5 * jax.random.normal(ks[6], (B, D, H, W), dtype=jnp.float32)

    # world [-1.75, 1.75] -> grid [0, 7]
    A_w2g = jnp.eye(3, dtype=jnp.float32) * 2.0
    world2grid = jnp.tile(
        jnp.concatenate(
            [jnp.concatenate([A_w2g, jnp.full((3, 1), 3.5, jnp.float32)], axis=1),
             jnp.array([[0.0, 0.0, 0.0, 1.0]], jnp.float32)], axis=0)[None],
        (B, 1, 1))
    world2orig = jnp.tile(jnp.eye(4, dtype=jnp.float32)[None], (B, 1, 1))
    rotated2gaps = jnp.tile(jnp.eye(4, dtype=jnp.float32)[None], (B, 1, 1))

    bbox_lower = -jnp.ones((B, 3), dtype=jnp.float32)
    bbox_upper = jnp.ones((B, 3), dtype=jnp.float32)

    source_idxs = jax.random.randint(ks[7], (NUM_PAIRS,), 0, NUM_NODES).astype(jnp.int32)
    target_idxs = jax.random.randint(ks[8], (NUM_PAIRS,), 0, NUM_NODES).astype(jnp.int32)
    pred_distances = jnp.abs(jax.random.normal(ks[9], (B, NUM_PAIRS))).astype(jnp.float32)
    pair_weights = jax.random.uniform(ks[10], (B, NUM_PAIRS)).astype(jnp.float32)

    affinity_matrix = jax.random.uniform(
        ks[11], (NUM_NEIGHBORS, NUM_NODES, NUM_NODES)).astype(jnp.float32)

    loss_total = sampler_loss_forward(
        embedding, uniform_samples, near_surface_samples, surface_samples,
        grid, world2grid, world2orig, rotated2gaps, bbox_lower, bbox_upper,
        source_idxs, target_idxs, pred_distances, pair_weights, affinity_matrix,
        evaluate=False)

    loss_total = jax.block_until_ready(loss_total)
    assert loss_total.shape == (1,)
    assert bool(jnp.isfinite(loss_total[0]))
    print("KERNEL_OK")
</pallas_src>

<mosaic_0001>
module attributes {stable_mosaic.version = 11 : i64} {
  func.func @point_loss_kernel(%arg0: i32, %arg1: i32, %arg2: i32, %arg3: memref<1x1x4x256xf32, #tpu.memory_space<vmem>>, %arg4: memref<1x16x8xf32, #tpu.memory_space<vmem>>, %arg5: memref<1x1x1x256xf32, #tpu.memory_space<vmem>>) attributes {dimension_semantics = [#tpu.dimension_semantics<parallel>, #tpu.dimension_semantics<parallel>, #tpu.dimension_semantics<parallel>], iteration_bounds = array<i64: 2, 2, 1>, scalar_prefetch = 0 : i64, scratch_operands = 0 : i64, tpu.core_type = #tpu.core_type<tc>, window_params = [{transform_indices = @transform_0, window_bounds = array<i64: 1, 1, 4, 256>}, {transform_indices = @transform_1, window_bounds = array<i64: 1, 16, 8>}, {transform_indices = @transform_2, window_bounds = array<i64: 1, 1, 1, 256>}]} {
    %c0 = arith.constant 0 : index
    %c0_0 = arith.constant 0 : index
    %c0_1 = arith.constant 0 : index
    %c0_2 = arith.constant 0 : index
    %0 = vector.load %arg3[%c0, %c0_0, %c0_1, %c0_2] : memref<1x1x4x256xf32, #tpu.memory_space<vmem>>, vector<1x1x1x256xf32>
    %1 = vector.shape_cast %0 : vector<1x1x1x256xf32> to vector<1x256xf32>
    %c0_3 = arith.constant 0 : index
    %c0_4 = arith.constant 0 : index
    %c1 = arith.constant 1 : index
    %c0_5 = arith.constant 0 : index
    %2 = vector.load %arg3[%c0_3, %c0_4, %c1, %c0_5] : memref<1x1x4x256xf32, #tpu.memory_space<vmem>>, vector<1x1x1x256xf32>
    %3 = vector.shape_cast %2 : vector<1x1x1x256xf32> to vector<1x256xf32>
    %c0_6 = arith.constant 0 : index
    %c0_7 = arith.constant 0 : index
    %c2 = arith.constant 2 : index
    %c0_8 = arith.constant 0 : index
    %4 = vector.load %arg3[%c0_6, %c0_7, %c2, %c0_8] : memref<1x1x4x256xf32, #tpu.memory_space<vmem>>, vector<1x1x1x256xf32>
    %5 = vector.shape_cast %4 : vector<1x1x1x256xf32> to vector<1x256xf32>
    %c0_9 = arith.constant 0 : index
    %c0_10 = arith.constant 0 : index
    %c3 = arith.constant 3 : index
    %c0_11 = arith.constant 0 : index
    %6 = vector.load %arg3[%c0_9, %c0_10, %c3, %c0_11] : memref<1x1x4x256xf32, #tpu.memory_space<vmem>>, vector<1x1x1x256xf32>
    %7 = vector.shape_cast %6 : vector<1x1x1x256xf32> to vector<1x256xf32>
    %c0_12 = arith.constant 0 : index
    %c0_13 = arith.constant 0 : index
    %c0_14 = arith.constant 0 : index
    %8 = vector.load %arg4[%c0_12, %c0_13, %c0_14] : memref<1x16x8xf32, #tpu.memory_space<vmem>>, vector<1x16x1xf32>
    %9 = vector.shape_cast %8 : vector<1x16x1xf32> to vector<16x1xf32>
    %c0_15 = arith.constant 0 : index
    %c0_16 = arith.constant 0 : index
    %c1_17 = arith.constant 1 : index
    %10 = vector.load %arg4[%c0_15, %c0_16, %c1_17] : memref<1x16x8xf32, #tpu.memory_space<vmem>>, vector<1x16x1xf32>
    %11 = vector.shape_cast %10 : vector<1x16x1xf32> to vector<16x1xf32>
    %c0_18 = arith.constant 0 : index
    %c0_19 = arith.constant 0 : index
    %c2_20 = arith.constant 2 : index
    %12 = vector.load %arg4[%c0_18, %c0_19, %c2_20] : memref<1x16x8xf32, #tpu.memory_space<vmem>>, vector<1x16x1xf32>
    %13 = vector.shape_cast %12 : vector<1x16x1xf32> to vector<16x1xf32>
    %c0_21 = arith.constant 0 : index
    %c0_22 = arith.constant 0 : index
    %c3_23 = arith.constant 3 : index
    %14 = vector.load %arg4[%c0_21, %c0_22, %c3_23] : memref<1x16x8xf32, #tpu.memory_space<vmem>>, vector<1x16x1xf32>
    %15 = vector.shape_cast %14 : vector<1x16x1xf32> to vector<16x1xf32>
    %c0_24 = arith.constant 0 : index
    %c0_25 = arith.constant 0 : index
    %c4 = arith.constant 4 : index
    %16 = vector.load %arg4[%c0_24, %c0_25, %c4] : memref<1x16x8xf32, #tpu.memory_space<vmem>>, vector<1x16x1xf32>
    %17 = vector.shape_cast %16 : vector<1x16x1xf32> to vector<16x1xf32>
    %c0_26 = arith.constant 0 : index
    %c0_27 = arith.constant 0 : index
    %c5 = arith.constant 5 : index
    %18 = vector.load %arg4[%c0_26, %c0_27, %c5] : memref<1x16x8xf32, #tpu.memory_space<vmem>>, vector<1x16x1xf32>
    %19 = vector.shape_cast %18 : vector<1x16x1xf32> to vector<16x1xf32>
    %c0_28 = arith.constant 0 : index
    %c0_29 = arith.constant 0 : index
    %c6 = arith.constant 6 : index
    %20 = vector.load %arg4[%c0_28, %c0_29, %c6] : memref<1x16x8xf32, #tpu.memory_space<vmem>>, vector<1x16x1xf32>
    %21 = vector.shape_cast %20 : vector<1x16x1xf32> to vector<16x1xf32>
    %22 = vector.broadcast %1 : vector<1x256xf32> to vector<16x256xf32>
    %23 = vector.broadcast %9 : vector<16x1xf32> to vector<16x256xf32>
    %24 = arith.subf %22, %23 : vector<16x256xf32>
    %25 = vector.broadcast %3 : vector<1x256xf32> to vector<16x256xf32>
    %26 = vector.broadcast %11 : vector<16x1xf32> to vector<16x256xf32>
    %27 = arith.subf %25, %26 : vector<16x256xf32>
    %28 = vector.broadcast %5 : vector<1x256xf32> to vector<16x256xf32>
    %29 = vector.broadcast %13 : vector<16x1xf32> to vector<16x256xf32>
    %30 = arith.subf %28, %29 : vector<16x256xf32>
    %31 = arith.mulf %24, %24 : vector<16x256xf32>
    %32 = vector.broadcast %15 : vector<16x1xf32> to vector<16x256xf32>
    %33 = arith.mulf %31, %32 : vector<16x256xf32>
    %34 = arith.mulf %27, %27 : vector<16x256xf32>
    %35 = vector.broadcast %17 : vector<16x1xf32> to vector<16x256xf32>
    %36 = arith.mulf %34, %35 : vector<16x256xf32>
    %37 = arith.addf %33, %36 : vector<16x256xf32>
    %38 = arith.mulf %30, %30 : vector<16x256xf32>
    %39 = vector.broadcast %19 : vector<16x1xf32> to vector<16x256xf32>
    %40 = arith.mulf %38, %39 : vector<16x256xf32>
    %41 = arith.addf %37, %40 : vector<16x256xf32>
    %cst = arith.constant -5.000000e-01 : f32
    %42 = vector.broadcast %cst : f32 to vector<16x256xf32>
    %43 = arith.mulf %42, %41 : vector<16x256xf32>
    %44 = math.exp %43 : vector<16x256xf32>
    %45 = vector.broadcast %21 : vector<16x1xf32> to vector<16x256xf32>
    %46 = arith.mulf %45, %44 : vector<16x256xf32>
    %cst_30 = arith.constant dense<0xFF800000> : vector<256xf32>
    %47 = vector.multi_reduction <maximumf>, %46, %cst_30 [0] : vector<16x256xf32> to vector<256xf32>
    %48 = vector.shape_cast %47 : vector<256xf32> to vector<1x256xf32>
    %cst_31 = arith.constant 0.000000e+00 : f32
    %49 = vector.broadcast %cst_31 : f32 to vector<1x256xf32>
    %50 = arith.subf %49, %48 : vector<1x256xf32>
    %cst_32 = arith.constant 0.00999999977 : f32
    %51 = vector.broadcast %cst_32 : f32 to vector<1x256xf32>
    %52 = arith.subf %50, %51 : vector<1x256xf32>
    %cst_33 = arith.constant 3.200000e+01 : f32
    %53 = vector.broadcast %cst_33 : f32 to vector<1x256xf32>
    %54 = arith.mulf %53, %52 : vector<1x256xf32>
    %55 = arith.negf %54 : vector<1x256xf32>
    %56 = math.exp %55 : vector<1x256xf32>
    %cst_34 = arith.constant 1.000000e+00 : f32
    %57 = vector.broadcast %cst_34 : f32 to vector<1x256xf32>
    %58 = arith.addf %57, %56 : vector<1x256xf32>
    %59 = arith.divf %57, %58 : vector<1x256xf32>
    %cst_35 = arith.constant 0.000000e+00 : f32
    %60 = vector.broadcast %cst_35 : f32 to vector<1x256xf32>
    %61 = arith.cmpf ogt, %7, %60 : vector<1x256xf32>
    %62 = arith.extui %61 : vector<1x256xi1> to vector<1x256xi32>
    %63 = arith.sitofp %62 : vector<1x256xi32> to vector<1x256xf32>
    %cst_36 = arith.constant 1.000000e+00 : f32
    %cst_37 = arith.constant 2.000000e+00 : f32
    %64 = vector.broadcast %cst_36 : f32 to vector<1x256xf32>
    %65 = vector.broadcast %cst_37 : f32 to vector<1x256xf32>
    %66 = arith.select %61, %64, %65 : vector<1x256xi1>, vector<1x256xf32>
    %67 = arith.subf %63, %59 : vector<1x256xf32>
    %68 = arith.mulf %66, %67 : vector<1x256xf32>
    %69 = arith.mulf %68, %67 : vector<1x256xf32>
    %c0_38 = arith.constant 0 : index
    %c0_39 = arith.constant 0 : index
    %c0_40 = arith.constant 0 : index
    %c0_41 = arith.constant 0 : index
    %70 = vector.load %arg5[%c0_38, %c0_39, %c0_40, %c0_41] : memref<1x1x1x256xf32, #tpu.memory_space<vmem>>, vector<1x1x1x256xf32>
    %71 = vector.shape_cast %70 : vector<1x1x1x256xf32> to vector<1x256xf32>
    %72 = vector.shape_cast %69 : vector<1x256xf32> to vector<1x1x1x256xf32>
    tpu.vector_store %arg5[%c0_38, %c0_39, %c0_40, %c0_41], %72 {strides = array<i32>} : memref<1x1x1x256xf32, #tpu.memory_space<vmem>>, vector<1x1x1x256xf32>,
    return
  }
  func.func @transform_0(%arg0: i32, %arg1: i32, %arg2: i32) -> (i32, i32, i32, i32) {
    %c0_i32 = arith.constant 0 : i32
    %c0_i32_0 = arith.constant 0 : i32
    return %arg0, %arg1, %c0_i32, %arg2 : i32, i32, i32, i32
  }
  func.func @transform_1(%arg0: i32, %arg1: i32, %arg2: i32) -> (i32, i32, i32) {
    %c0_i32 = arith.constant 0 : i32
    %c0_i32_0 = arith.constant 0 : i32
    %c0_i32_1 = arith.constant 0 : i32
    return %arg1, %c0_i32, %c0_i32_0 : i32, i32, i32
  }
  func.func @transform_2(%arg0: i32, %arg1: i32, %arg2: i32) -> (i32, i32, i32, i32) {
    %c0_i32 = arith.constant 0 : i32
    %c0_i32_0 = arith.constant 0 : i32
    return %arg0, %arg1, %c0_i32, %arg2 : i32, i32, i32, i32
  }
}

</mosaic_0001>

<bundles_post_ra>
// kernel: tpu_custom_call.1
= control target key start
LH: loop header
LB: loop body
LE: loop exit
PB: predicated region body
PF: predicated region fallthrough
CT: control target
= control target key end

     0   :  { %7 = vsyncpa [#allocation3], 0  ;;  %s972_s0 = inlined_call_operand.vmem [shape: f32[2,2,4,256], index: 0, kind: input, shape index: {}]   ;;  %s973_s1 = inlined_call_operand.vmem [shape: f32[2,16,8], index: 1, kind: input, shape index: {}]   ;;  %s974_s2 = inlined_call_operand.hbm [shape: f32[2,2,1,256], index: 2, kind: output, shape index: {}]  }
   0x1   :  { %9 = vsyncpa [#allocation3 + $0x1], 0  ;;  %s815_s9 = smov 0   ;;  %s817_s10 = smov 0  }
   0x2   :  { %s819_s11 = smov 0   ;;  %s821_s12 = smov 0  }
   0x3   :  { %s823_s13 = smov 0   ;;  %s825_s14 = smov 0  }
   0x4   :  { %s827_s15 = smov 0   ;;  %s829_s16 = smov 0  }
   0x5 LB: > { %s559_s17 = sadd.s32 4294967295, %s787_s16   ;;  %s560_s18 = sadd.s32 4294967294, %s787_s16   ;;  %s787_s16 = sphi %s829_s16, %s15_s16   ;;  %s783_s15 = sphi %s827_s15, %s983_s15   ;;  %s779_s14 = sphi %s825_s14, %s982_s14   ;;  %s775_s13 = sphi %s823_s13, %s981_s13   ;;  %s771_s12 = sphi %s821_s12, %s980_s12   ;;  %s767_s11 = sphi %s819_s11, %s979_s11   ;;  %s763_s10 = sphi %s817_s10, %s978_s10   ;;  %s759_s9 = sphi %s815_s9, %s977_s9  }
   0x6   : > { %s30_s19 = sadd.s32 1, %s779_s14  ;;  %s34_s20 = sadd.s32 1, %s783_s15 }
   0x7   : > { %p32_p0 = scmp.ge.s32.totalorder %s30_s19, 2  ;;  %p111_p1 = scmp.ne.s32.totalorder %s767_s11, %s763_s10 }
   0x8   : > { %p112_p2 = scmp.eq.s32.totalorder %s559_s17, 3  ;;  %p117_p5 = scmp.ne.s32.totalorder %s763_s10, %s759_s9 }
   0x9   : > { %s985_s19 = smov (%p32_p0, %s30_s19), 0  ;;  %s987_s20 = smov (!%p32_p0, %s34_s20), %s783_s15 }
   0xa   : > { %s95_s21 = ssub.s32 %s779_s14, %s985_s19  ;;  %p866_p3 = por %p112_p2, %p111_p1 }
   0xb   : > { %p36_p4 = scmp.ge.s32.totalorder %s987_s20, 2  ;;  %p118_p6 = scmp.eq.s32.totalorder %s560_s18, 3 }
   0xc   : > { %p563_p7 = scmp.ge.s32.totalorder %s787_s16, 1  ;;  %p161_p9 = scmp.lt.s32.totalorder %s787_s16, 5 }
   0xd   : > { %s989_s20 = smov (%p36_p4, %s987_s20), 0  ;;  %p875_p8 = por %p118_p6, %p117_p5 }
   0xe   : > { %s94_s24 = ssub.s32 %s783_s15, %s989_s20  ;;  %s101_s25 = sadd.s32 1, %s767_s11 }
   0xf   : > { %s96_s26 = sor.u32 %s95_s21, %s94_s24  ;;  %p162_p10 = pnand %p563_p7, %p161_p9 }
  0x10   : > { %p99_p11 = scmp.eq.s32.totalorder %s96_s26, 0  ;;  %p199_p12 = scmp.lt.s32.totalorder (!%p162_p10), %s771_s12, 1  ;;  %v789_v0 = vmov (!%p162_p10), 1   ;;  %v790_v1 = vmov (!%p162_p10), 0   ;;  %v791_v4 = vmov (!%p162_p10), 2   ;;  %v792_v5 = vmov (!%p162_p10), 3  }
  0x11   : > { %165 = sbr.rel (%p162_p10) target bundleno = 279 (0x117), region = 28  ;;  %667 = vset.pattern.permute.xlu1 (!%p162_p10), %v789_v0  ;;  %666 = vset.pattern.permute.xlu0 (!%p162_p10), %v790_v1  ;;  %v793_v6 = vmov (!%p162_p10), 4   ;;  %v794_v7 = vmov (!%p162_p10), 5   ;;  %v795_v8 = vmov (!%p162_p10), 6   ;;  %p197_p13 = scmp.lt.s32.totalorder (!%p162_p10), %s775_s13, 1  ;;  %v226_v9 = vlaneseq (!%p162_p10) }
  0x12   : > { %s884_s27 = scalar_select %p99_p11, %s767_s11, %s101_s25  }
  0x13   : > { %v898_v12 = vshrl.u32 (!%p162_p10), %v226_v9, 7  ;;  %s193_s25 = sand.u32 (!%p162_p10), 1, %s763_s10   ;;  %vm435_vm1 = vcmp.lt.s32.totalorder (!%p162_p10), %v226_v9, 256 }
  0x14   : > { %s564_s26 = sshll.u32 (!%p162_p10), %s193_s25, 1 }
  0x15   : > { %v228_v16 = vsub.s32 (!%p162_p10), 0, %v898_v12  ;;  %v232_v17 = vsub.s32 (!%p162_p10), 1, %v898_v12 }
  0x18   : > { %s888_s28 = scalar_select %p199_p12, %s771_s12, 1 }
  0x19   : > { %s198_s5 = scalar_select %p197_p13, %s775_s13, 1 }
  0x1a   : > { %s584_s29 = sshll.u32 %s888_s28, 4  ;;  %s565_s6 = sshll.u32 %s888_s28, 1 }
  0x1b   : > { %s214_s4 = scalar_lea.vmem %s973_s1, %s584_s29  ;;  %s566_s7 = sshll.u32 %s198_s5, 2 }
  0x1c   : > { %v223_v2 = vld [vmem:[%s214_s4] sm:$0xff]  ;;  %v224_v3 = vld [vmem:[%s214_s4 + $0x8] sm:$0xff]  ;;  %s206_s8 = sadd.s32 %s566_s7, %s565_s6  ;;  %s579_s28 = sshll.u32 %s771_s12, 1 }
  0x1d   : > { %262 = vperm.xlu1 %667, %v223_v2   ;;  %238 = vperm.xlu0 %666, %v223_v2   ;;  %s567_s17 = sshll.u32 %s206_s8, 2  ;;  %s580_s29 = sshll.u32 %s775_s13, 2 }
  0x1e   : > { %s903_s24 = scalar_lea.vmem %s972_s0, %s567_s17  ;;  %s453_s30 = sadd.s32 %s580_s29, %s579_s28 }
  0x1f   : > { %v216_v13 = vld [vmem:[%s903_s24] ss:$4 sm:$0x3]  ;;  %v570_v18 = vld [vmem:[%s903_s24 + $0x1] ss:$4 sm:$0x3] }
  0x20   : > { %v229_v19 = vrot.slane %v216_v13, %v228_v16  ;;  %v233_v20 = vrot.slane %v216_v13, %v232_v17  ;;  %v571_v21 = vld [vmem:[%s903_s24 + $0x2] ss:$4 sm:$0x3]  ;;  %v254_v24 = vrot.slane %v570_v18, %v228_v16  ;;  %v258_v25 = vrot.slane %v570_v18, %v232_v17  ;;  %s581_s3 = sshll.u32 %s453_s30, 4  ;;  %s195_s4 = scalar_lea.vmem [#allocation2], %s564_s26 }
  0x21   : > { %266 = vperm.xlu1 %667, %v224_v3   ;;  %243 = vperm.xlu0 %666, %v224_v3   ;;  %v277_v26 = vrot.slane %v571_v21, %v228_v16  ;;  %v281_v27 = vrot.slane %v571_v21, %v232_v17  ;;  %s457_s5 = sshll.u32 %s195_s4, 4  ;;  %s919_s12 = scalar_lea.hbm %s974_s2, %s581_s3  ;;  %s921_s5 = int_to_ptr.vmem [resolvable:$true] %s457_s5 }
  0x22   : > { %s439_s13 = scalar_lea.sflag [#allocation3], %s193_s25  ;;  %s693_s8 = scalar_lea.vmem %s921_s5, 32 }
  0x23   : > { %p694_p0 = scmp.ne.s32.totalorder %s921_s5, %s693_s8  ;;  %s799_s17 = smov [#allocation2]  }
  0x24   : > { %s697_s18 = sshll.u32 %s799_s17, 4  ;;  %s698_s18 = int_to_ptr.vmem [resolvable:$false] %s697_s18 }
  0x25   : > { %669 = vset.pattern.permute.xlu1 %v791_v4  ;;  %668 = vset.pattern.permute.xlu0 %v791_v4  ;;  %p695_p1 = pnand %p694_p0, %p866_p3  ;;  %s699_s21 = scalar_lea.vmem %s698_s18, 64 }
  0x26   : > { %289 = vperm.xlu1 %669, %v224_v3   ;;  %285 = vperm.xlu0 %668, %v223_v2   ;;  %p700_p4 = scmp.lt.s32.totalorder %s921_s5, %s698_s18  ;;  %p701_p5 = scmp.lt.s32.totalorder %s699_s21, %s693_s8 }
  0x27   : > { %p696_p2 = pneg %p695_p1 }
  0x28   : > { %p702_p6 = por %p701_p5, %p700_p4 }
  0x2a   : > { %670 = vset.pattern.permute.xlu1 %v792_v5  ;;  %671 = vset.pattern.permute.xlu0 %v792_v5  ;;  %p703_p7 = pnand %p702_p6, %p696_p2 }
  0x2b   : > { %301 = vperm.xlu1 %670, %v223_v2   ;;  %305 = vperm.xlu0 %671, %v224_v3  }
  0x2f   : > { %672 = vset.pattern.permute.xlu1 %v793_v6  ;;  %673 = vset.pattern.permute.xlu0 %v794_v7 }
  0x30   : > { %317 = vperm.xlu1 %672, %v223_v2   ;;  %337 = vperm.xlu0 %673, %v223_v2  }
  0x34   : > { %321 = vperm.xlu1 %672, %v224_v3   ;;  %676 = vset.pattern.permute.xlu0 %v795_v8 }
  0x35   : > { %369 = vperm.xlu0 %676, %v224_v3  }
  0x38   : > { %674 = vset.pattern.permute.xlu1 %v794_v7 }
  0x39   : > { %341 = vperm.xlu1 %674, %v224_v3  }
  0x3d   : > { %675 = vset.pattern.permute.xlu1 %v795_v8 }
  0x3e   : > { %365 = vperm.xlu1 %675, %v223_v2  }
  0x9c   : > { %v263_v10 = vpop.permute.xlu1 %262  ;;  %v239_v11 = vpop.permute.xlu0 %238 }
  0x9d   : > { %v246_v28 = vsub.f32 %v229_v19, %v239_v11  ;;  %v247_v29 = vsub.f32 %v233_v20, %v239_v11  ;;  %v269_v32 = vsub.f32 %v254_v24, %v263_v10  ;;  %v270_v33 = vsub.f32 %v258_v25, %v263_v10 }
  0x9f   : > { %v296_v35 = vmul.f32 %v246_v28, %v246_v28  ;;  %v297_v36 = vmul.f32 %v247_v29, %v247_v29  ;;  %v312_v40 = vmul.f32 %v269_v32, %v269_v32  ;;  %v313_v41 = vmul.f32 %v270_v33, %v270_v33 }
  0xa0   : > { %v267_v14 = vpop.permute.xlu1 %266  ;;  %v244_v15 = vpop.permute.xlu0 %243 }
  0xa1   : > { %v271_v42 = vsub.f32 %v254_v24, %v267_v14  ;;  %v272_v43 = vsub.f32 %v258_v25, %v267_v14  ;;  %v248_v44 = vsub.f32 %v229_v19, %v244_v15  ;;  %v249_v45 = vsub.f32 %v233_v20, %v244_v15 }
  0xa3   : > { %v314_v54 = vmul.f32 %v271_v42, %v271_v42  ;;  %v315_v58 = vmul.f32 %v272_v43, %v272_v43  ;;  %v298_v59 = vmul.f32 %v248_v44, %v248_v44  ;;  %v299_v60 = vmul.f32 %v249_v45, %v249_v45 }
  0xa5   : > { %v290_v22 = vpop.permute.xlu1 %289  ;;  %v286_v23 = vpop.permute.xlu0 %285 }
  0xa6   : > { %v292_v30 = vsub.f32 %v277_v26, %v286_v23  ;;  %v293_v31 = vsub.f32 %v281_v27, %v286_v23  ;;  %v294_v55 = vsub.f32 %v277_v26, %v290_v22  ;;  %v295_v61 = vsub.f32 %v281_v27, %v290_v22 }
  0xa8   : > { %v332_v38 = vmul.f32 %v292_v30, %v292_v30  ;;  %v333_v39 = vmul.f32 %v293_v31, %v293_v31  ;;  %v334_v3 = vmul.f32 %v294_v55, %v294_v55  ;;  %v335_v4 = vmul.f32 %v295_v61, %v295_v61 }
  0xaa   : > { %v302_v34 = vpop.permute.xlu1 %301  ;;  %v306_v37 = vpop.permute.xlu0 %305 }
  0xab   : > { %v308_v46 = vmul.f32 %v302_v34, %v296_v35  ;;  %v309_v47 = vmul.f32 %v302_v34, %v297_v36  ;;  %v310_v5 = vmul.f32 %v306_v37, %v298_v59  ;;  %v311_v6 = vmul.f32 %v306_v37, %v299_v60 }
  0xac   : > { %v796_v60 = vmov 1966171168  }
  0xad   : > { %v416_v61 = vunpack.c.l.s4 %v796_v60 }
  0xaf   : > { %v318_v48 = vpop.permute.xlu1 %317  ;;  %v338_v49 = vpop.permute.xlu0 %337 }
  0xb0   : > { %v324_v50 = vmul.f32 %v318_v48, %v312_v40  ;;  %v325_v51 = vmul.f32 %v318_v48, %v313_v41  ;;  %v344_v52 = vmul.f32 %v338_v49, %v332_v38  ;;  %v345_v53 = vmul.f32 %v338_v49, %v333_v39 }
  0xb2   : > { %v328_v56 = vadd.f32 %v324_v50, %v308_v46  ;;  %v329_v57 = vadd.f32 %v325_v51, %v309_v47 }
  0xb3   : > { %v322_v62 = vpop.permute.xlu1 %321 }
  0xb4   : > { %v348_v63 = vadd.f32 %v344_v52, %v328_v56  ;;  %v349_v0 = vadd.f32 %v345_v53, %v329_v57  ;;  %v326_v1 = vmul.f32 %v322_v62, %v314_v54  ;;  %v327_v2 = vmul.f32 %v322_v62, %v315_v58  ;;  %v370_v26 = vpop.permute.xlu0 %369 }
  0xb5   : > { %v417_v62 = vunpack.c.0.s8 %v416_v61 }
  0xb6   : > { %v352_v7 = vmul.f32 -0.5, %v348_v63  ;;  %v353_v8 = vmul.f32 -0.5, %v349_v0  ;;  %v330_v11 = vadd.f32 %v326_v1, %v310_v5  ;;  %v331_v13 = vadd.f32 %v327_v2, %v311_v6  ;;  %v572_v63 = vld [vmem:[%s903_s24 + $0x3] ss:$4 sm:$0x3] }
  0xb7   : > { %v420_v1 = vsub.s32 %v417_v62, %v898_v12  ;;  %vm408_vm0 = vcmp.gt.f32.partialorder %v572_v63, 0.0  ;;  %v797_v5 = vmov 0.0  }
  0xb8   : > { %v342_v10 = vpop.permute.xlu1 %341  ;;  %v356_v16 = vmul.f32 1.442695, %v352_v7  ;;  %v358_v19 = vmul.f32 1.442695, %v353_v8  ;;  %v577_v6 = vsel %vm408_vm0, 1.0, %v797_v5  ;;  %v798_v8 = vmov 2.0  }
  0xb9   : > { %v346_v14 = vmul.f32 %v342_v10, %v334_v3  ;;  %v347_v15 = vmul.f32 %v342_v10, %v335_v4  ;;  %v411_v10 = vsel %vm408_vm0, 1.0, %v798_v8 }
  0xba   : > { %677 = vpow2.f32 %v356_v16 }
  0xbb   : > { %v350_v17 = vadd.f32 %v346_v14, %v330_v11  ;;  %v351_v18 = vadd.f32 %v347_v15, %v331_v13  ;;  %679 = vpow2.f32 %v358_v19 }
  0xbd   : > { %v354_v20 = vmul.f32 -0.5, %v350_v17  ;;  %v355_v21 = vmul.f32 -0.5, %v351_v18  ;;  %v366_v25 = vpop.permute.xlu1 %365 }
  0xbf   : > { %v360_v22 = vmul.f32 1.442695, %v354_v20  ;;  %v362_v23 = vmul.f32 1.442695, %v355_v21 }
  0xc1   : > { %681 = vpow2.f32 %v360_v22 }
  0xc2   : > { %683 = vpow2.f32 %v362_v23 }
  0xc4   : > { %v678_v24 = vpop.eup %677 }
  0xc5   : > { %v680_v27 = vpop.eup %679  ;;  %v372_v30 = vmul.f32 %v678_v24, %v366_v25 }
  0xc6   : > { %v373_v32 = vmul.f32 %v680_v27, %v366_v25 }
  0xcb   : > { %v682_v28 = vpop.eup %681 }
  0xcc   : > { %v684_v29 = vpop.eup %683  ;;  %v374_v31 = vmul.f32 %v682_v28, %v370_v26 }
  0xcd   : > { %v375_v33 = vmul.f32 %v684_v29, %v370_v26 }
  0xce   : > { %v376_v34 = vmax.f32 %v372_v30, %v374_v31 }
  0xcf   : > { %v383_v35 = vmax.f32 %v373_v32, %v375_v33 }
  0xd0   : > { %v377_v36 = vrot.slane %v376_v34, 4 }
  0xd1   : > { %v384_v37 = vrot.slane %v383_v35, 4 }
  0xd2   : > { %v378_v38 = vmax.f32 %v376_v34, %v377_v36 }
  0xd3   : > { %v385_v39 = vmax.f32 %v383_v35, %v384_v37 }
  0xd4   : > { %v379_v40 = vrot.slane %v378_v38, 2 }
  0xd5   : > { %v386_v41 = vrot.slane %v385_v39, 2 }
  0xd6   : > { %v380_v42 = vmax.f32 %v378_v38, %v379_v40 }
  0xd7   : > { %v387_v43 = vmax.f32 %v385_v39, %v386_v41 }
  0xd8   : > { %v381_v44 = vrot.slane %v380_v42, 1 }
  0xd9   : > { %v388_v45 = vrot.slane %v387_v43, 1 }
  0xda   : > { %v382_v46 = vmax.f32 %v380_v42, %v381_v44 }
  0xdb   : > { %v389_v47 = vmax.f32 %v387_v43, %v388_v45 }
  0xdc   : > { %v390_v48 = vsub.f32 0.0, %v382_v46 }
  0xdd   : > { %v391_v49 = vsub.f32 0.0, %v389_v47 }
  0xde   : > { %v573_v50 = vadd.f32 -0.01, %v390_v48 }
  0xdf   : > { %v574_v51 = vadd.f32 -0.01, %v391_v49 }
  0xe0   : > { %v575_v52 = vmul.f32 -32.0, %v573_v50 }
  0xe1   : > { %v576_v53 = vmul.f32 -32.0, %v574_v51 }
  0xe2   : > { %v398_v54 = vmul.f32 1.442695, %v575_v52 }
  0xe3   : > { %v400_v55 = vmul.f32 1.442695, %v576_v53 }
  0xe4   : > { %685 = vpow2.f32 %v398_v54 }
  0xe5   : > { %687 = vpow2.f32 %v400_v55 }
  0xee   : > { %v686_v56 = vpop.eup %685 }
  0xef   : > { %v688_v57 = vpop.eup %687  ;;  %v402_v58 = vadd.f32 1.0, %v686_v56 }
  0xf0   : > { %v403_v59 = vadd.f32 1.0, %v688_v57 }
  0xf1   : > { %689 = vrcp.f32 %v402_v58 }
  0xf2   : > { %691 = vrcp.f32 %v403_v59 }
  0xfb   : > { %v690_v0 = vpop.eup %689 }
  0xfc   : > { %v692_v2 = vpop.eup %691 }
  0xfd   : > { %v414_v3 = vcombine.low %v690_v0, %v692_v2 }
  0xff   : > { %v421_v4 = vrot.slane %v414_v3, %v420_v1 }
 0x101   : > { %v428_v7 = vrot.slane %v421_v4, %v420_v1 }
 0x103   : > { %v430_v11 = vsub.f32 %v577_v6, %v428_v7 }
 0x105   : > { %v431_v13 = vmul.f32 %v430_v11, %v411_v10 }
 0x107   : > { %v432_v12 = vmul.f32 %v431_v13, %v430_v11 }
 0x109   : > { %437 = vst.msk [vmem:[%s195_s4] sm:$0x3] %vm435_vm1, %v432_v12 }
 0x10a   : > { %706 = shalt.err (!%p703_p7)
}
 0x10b   : > { %s707_s24 = scalar_lea.hbm %s919_s12, 32  ;;  %s711_s28 = scalar_lea.hbm %s974_s2, 128 }
 0x10c   : > { %p708_p9 = scmp.ne.s32.totalorder %s919_s12, %s707_s24  ;;  %p712_p12 = scmp.lt.u32.totalorder %s919_s12, %s974_s2 }
 0x10d   : > { %p713_p13 = scmp.lt.u32.totalorder %s711_s28, %s707_s24  ;;  %p715_p1 = scmp.lt.u32.totalorder %s707_s24, %s919_s12 }
 0x10e   : > { %p709_p10 = pnand %p708_p9, %p866_p3 }
 0x10f   : > { %p714_p0 = por %p713_p13, %p712_p12 }
 0x110   : > { %p710_p11 = pneg %p709_p10 }
 0x111   : > { %p716_p2 = por %p715_p1, %p714_p0 }
 0x113   : > { %p717_p4 = pnand %p716_p2, %p710_p11 }
 0x115   : > { %720 = shalt.err (!%p717_p4)
}
 0x116   : > { %585 = dma.vmem_to_hbm [thread:$0]  (%p866_p3), %s921_s5, 32, %s919_s12, %s439_s13  }
 0x117 PF: > { %p591_p5 = scmp.ge.s32.totalorder %s787_s16, 2  ;;  %s469_s3 = sand.u32 1, %s759_s9  }
 0x118   : > { %s470_s4 = scalar_lea.sflag [#allocation3], %s469_s3 }
 0x119   : > { %p588_p6 = pnand %p591_p5, %p875_p8 }
 0x11b   : > { %754 = dma.done.wait (!%p588_p6), %s470_s4, 32  }
 0x11c   : > { %756 = vsyncadd (!%p588_p6), %s470_s4, 4294967264  ;;  %s15_s16 = sadd.s32 1, %s787_s16   ;;  %s977_s9 = smov %s763_s10 }
 0x11d   : > { %p12_p7 = scmp.ge.s32.totalorder %s15_s16, 6   ;;  %s978_s10 = smov %s767_s11 }
 0x11e   : > { %s979_s11 = smov %s884_s27  ;;  %s980_s12 = smov %s779_s14 }
 0x11f   : > { %s981_s13 = smov %s783_s15  ;;  %s982_s14 = smov %s985_s19 }
 0x120   : > { %s983_s15 = smov %s989_s20  ;;  %14 = sbr.rel (!%p12_p7) target bundleno = 5 (0x5), region = 69 }
 0x127   :  { %475 = vsyncpa [#allocation3], 1 }
 0x128   :  { %477 = vsyncpa [#allocation3 + $0x1], 1 }

</bundles_post_ra>
